<compile_context>
chip_gen: v5e
topology: v5e:2x2
jax: 0.10.0
libtpu: 0.0.40
codegen_flags: <defaults>
</compile_context>

<pallas_src>
import jax
import jax.numpy as jnp
from jax.experimental import pallas as pl
from jax.experimental.pallas import tpu as pltpu

LANE = 128  # TPU lane width


def _round_up(x: int, m: int) -> int:
    return ((x + m - 1) // m) * m


def decoder_fc_kernel(x_ref, w1_ref, b1_ref, w2_ref, b2_ref, w3_ref, b3_ref, o_ref):
    """Fused [FC-ReLU]x3 on one (TB, feat_i) batch tile; weights resident in VMEM.

    Matmul operands are in the compute dtype (bf16 or f32); accumulation, bias-add
    and ReLU are in f32; activations are cast back to the compute dtype between
    layers only to feed the next MXU pass.
    """
    x = x_ref[...]                                   # (TB, feat_i), compute dtype
    cdt = x.dtype

    # Layer 1: (TB, feat_i) @ (feat_i, feat_h) + (1, feat_h) -> ReLU
    h1 = jnp.dot(x, w1_ref[...], preferred_element_type=jnp.float32) + b1_ref[...]
    h1 = jnp.maximum(h1, 0.0).astype(cdt)

    # Layer 2: (TB, feat_h) @ (feat_h, feat_h) + (1, feat_h) -> ReLU
    h2 = jnp.dot(h1, w2_ref[...], preferred_element_type=jnp.float32) + b2_ref[...]
    h2 = jnp.maximum(h2, 0.0).astype(cdt)

    # Layer 3: (TB, feat_h) @ (feat_h, feat_o_padded) + (1, feat_o_padded) -> ReLU
    h3 = jnp.dot(h2, w3_ref[...], preferred_element_type=jnp.float32) + b3_ref[...]
    h3 = jnp.maximum(h3, 0.0)

    o_ref[...] = h3.astype(o_ref.dtype)              # lane-dense (TB, feat_o_padded) store


def decoder_fc(x, w1, b1, w2, b2, w3, b3, *, block_b=512,
               compute_dtype=jnp.bfloat16, out_dtype=None):
    """Fused DecoderFC forward.

    x  : (B, feat_i)
    w1 : (feat_i, feat_h), b1 : (1, feat_h)
    w2 : (feat_h, feat_h), b2 : (1, feat_h)
    w3 : (feat_h, feat_o), b3 : (1, feat_o)
    returns (B, feat_o) in `out_dtype` (defaults to x.dtype)
    """
    B, feat_i = x.shape
    feat_h = w1.shape[1]
    feat_o = w3.shape[1]
    out_dtype = x.dtype if out_dtype is None else out_dtype

    # --- lane-dense output: pad feat_o (and W3/b3 columns, with zeros) to 128 lanes
    feat_o_p = _round_up(max(feat_o, LANE), LANE)
    if feat_o_p != feat_o:
        w3 = jnp.pad(w3, ((0, 0), (0, feat_o_p - feat_o)))
        b3 = jnp.pad(b3, ((0, 0), (0, feat_o_p - feat_o)))

    # --- batch tiling: TB multiple of 8 (sublane), capped at block_b; pad B up
    TB = min(block_b, _round_up(B, 8))
    B_p = _round_up(B, TB)
    if B_p != B:
        x = jnp.pad(x, ((0, B_p - B), (0, 0)))

    # --- dtypes: matmul operands in compute dtype, biases stay f32
    x_c = x.astype(compute_dtype)
    w1_c = w1.astype(compute_dtype)
    w2_c = w2.astype(compute_dtype)
    w3_c = w3.astype(compute_dtype)
    b1_f = b1.astype(jnp.float32)
    b2_f = b2.astype(jnp.float32)
    b3_f = b3.astype(jnp.float32)

    grid = (pl.cdiv(B_p, TB),)

    # Weights/biases: constant index_map -> VMEM-resident across all grid steps.
    const = lambda a: pl.BlockSpec(a.shape, lambda i: (0, 0))

    out_p = pl.pallas_call(
        decoder_fc_kernel,
        out_shape=jax.ShapeDtypeStruct((B_p, feat_o_p), out_dtype),
        grid=grid,
        in_specs=[
            pl.BlockSpec((TB, feat_i), lambda i: (i, 0)),   # x: tiled over batch
            const(w1_c), const(b1_f),
            const(w2_c), const(b2_f),
            const(w3_c), const(b3_f),
        ],
        out_specs=pl.BlockSpec((TB, feat_o_p), lambda i: (i, 0)),
        compiler_params=pltpu.CompilerParams(
            dimension_semantics=("parallel",),              # 2-TC sharding on v7x
        ),
    )(x_c, w1_c, b1_f, w2_c, b2_f, w3_c, b3_f)

    return out_p[:B, :feat_o]


def init_linear(key, fan_in, fan_out):
    """Deterministic init mimicking PyTorch nn.Linear (uniform +/- 1/sqrt(fan_in)).

    Returns W pre-transposed as (fan_in, fan_out) and bias as (1, fan_out).
    """
    kw, kb = jax.random.split(key)
    bound = 1.0 / jnp.sqrt(fan_in)
    w = jax.random.uniform(kw, (fan_in, fan_out), jnp.float32, -bound, bound)
    b = jax.random.uniform(kb, (1, fan_out), jnp.float32, -bound, bound)
    return w, b


def reference_decoder_fc(x, w1, b1, w2, b2, w3, b3):
    h = jnp.maximum(x @ w1 + b1, 0.0)
    h = jnp.maximum(h @ w2 + b2, 0.0)
    return jnp.maximum(h @ w3 + b3, 0.0)


if __name__ == "__main__":
    # ConfDecoderFC(feat_i=8, feat_h=32, feat_o=16)
    feat_i, feat_h, feat_o = 8, 32, 16

    key = jax.random.PRNGKey(0)
    kx, k1, k2, k3, kx2 = jax.random.split(key, 5)

    w1, b1 = init_linear(k1, feat_i, feat_h)
    w2, b2 = init_linear(k2, feat_h, feat_h)
    w3, b3 = init_linear(k3, feat_h, feat_o)

    # --- 1) tiny batch (matches the module's typical use), f32 path, tight check
    B = 2
    x = jax.random.normal(kx, (B, feat_i), jnp.float32)
    out_f32 = decoder_fc(x, w1, b1, w2, b2, w3, b3, compute_dtype=jnp.float32)
    out_f32 = jax.block_until_ready(out_f32)
    ref = reference_decoder_fc(x, w1, b1, w2, b2, w3, b3)
    assert out_f32.shape == (B, feat_o), out_f32.shape
    assert jnp.allclose(out_f32, ref, atol=1e-5, rtol=1e-5), "f32 mismatch vs JAX reference"

    # --- 2) multi-tile grid, bf16 matmul operands (optimized path), loose check
    B2 = 512
    x2 = jax.random.normal(kx2, (B2, feat_i), jnp.float32)
    out_bf16 = decoder_fc(x2, w1, b1, w2, b2, w3, b3,
                          block_b=128, compute_dtype=jnp.bfloat16)
    out_bf16 = jax.block_until_ready(out_bf16)
    ref2 = reference_decoder_fc(x2, w1, b1, w2, b2, w3, b3)
    assert out_bf16.shape == (B2, feat_o), out_bf16.shape
    assert jnp.allclose(out_bf16, ref2, atol=5e-2, rtol=5e-2), "bf16 mismatch vs JAX reference"

    print("KERNEL_OK")
</pallas_src>

<mosaic_0001>
module attributes {stable_mosaic.version = 11 : i64} {
  func.func @decoder_fc_kernel(%arg0: i32, %arg1: memref<8x8xf32, #tpu.memory_space<vmem>>, %arg2: memref<8x32xf32, #tpu.memory_space<vmem>>, %arg3: memref<1x32xf32, #tpu.memory_space<vmem>>, %arg4: memref<32x32xf32, #tpu.memory_space<vmem>>, %arg5: memref<1x32xf32, #tpu.memory_space<vmem>>, %arg6: memref<32x128xf32, #tpu.memory_space<vmem>>, %arg7: memref<1x128xf32, #tpu.memory_space<vmem>>, %arg8: memref<8x128xf32, #tpu.memory_space<vmem>>) attributes {dimension_semantics = [#tpu.dimension_semantics<parallel>], iteration_bounds = array<i64: 1>, scalar_prefetch = 0 : i64, scratch_operands = 0 : i64, tpu.core_type = #tpu.core_type<tc>, window_params = [{transform_indices = @transform_0, window_bounds = array<i64: 8, 8>}, {pipeline_mode = #tpu.pipeline_mode<synchronous>, transform_indices = @transform_1, window_bounds = array<i64: 8, 32>}, {pipeline_mode = #tpu.pipeline_mode<synchronous>, transform_indices = @transform_2, window_bounds = array<i64: 1, 32>}, {pipeline_mode = #tpu.pipeline_mode<synchronous>, transform_indices = @transform_3, window_bounds = array<i64: 32, 32>}, {pipeline_mode = #tpu.pipeline_mode<synchronous>, transform_indices = @transform_4, window_bounds = array<i64: 1, 32>}, {pipeline_mode = #tpu.pipeline_mode<synchronous>, transform_indices = @transform_5, window_bounds = array<i64: 32, 128>}, {pipeline_mode = #tpu.pipeline_mode<synchronous>, transform_indices = @transform_6, window_bounds = array<i64: 1, 128>}, {transform_indices = @transform_7, window_bounds = array<i64: 8, 128>}]} {
    %c0 = arith.constant 0 : index
    %c0_0 = arith.constant 0 : index
    %0 = vector.load %arg1[%c0, %c0_0] : memref<8x8xf32, #tpu.memory_space<vmem>>, vector<8x8xf32>
    %c0_1 = arith.constant 0 : index
    %c0_2 = arith.constant 0 : index
    %1 = vector.load %arg2[%c0_1, %c0_2] : memref<8x32xf32, #tpu.memory_space<vmem>>, vector<8x32xf32>
    %cst = arith.constant dense<0.000000e+00> : vector<8x32xf32>
    %2 = tpu.matmul %0, %1, %cst {dimension_numbers = #tpu.dot_dimension_numbers<[1], [0], [0], [1], [0, 0, 1, 1], [], []>} : vector<8x8xf32>, vector<8x32xf32>, vector<8x32xf32> -> vector<8x32xf32>
    %c0_3 = arith.constant 0 : index
    %c0_4 = arith.constant 0 : index
    %3 = vector.load %arg3[%c0_3, %c0_4] : memref<1x32xf32, #tpu.memory_space<vmem>>, vector<1x32xf32>
    %4 = vector.broadcast %3 : vector<1x32xf32> to vector<8x32xf32>
    %5 = arith.addf %2, %4 : vector<8x32xf32>
    %cst_5 = arith.constant 0.000000e+00 : f32
    %6 = vector.broadcast %cst_5 : f32 to vector<8x32xf32>
    %7 = arith.maximumf %5, %6 : vector<8x32xf32>
    %c0_6 = arith.constant 0 : index
    %c0_7 = arith.constant 0 : index
    %8 = vector.load %arg4[%c0_6, %c0_7] : memref<32x32xf32, #tpu.memory_space<vmem>>, vector<32x32xf32>
    %cst_8 = arith.constant dense<0.000000e+00> : vector<8x32xf32>
    %9 = tpu.matmul %7, %8, %cst_8 {dimension_numbers = #tpu.dot_dimension_numbers<[1], [0], [0], [1], [0, 0, 1, 1], [], []>} : vector<8x32xf32>, vector<32x32xf32>, vector<8x32xf32> -> vector<8x32xf32>
    %c0_9 = arith.constant 0 : index
    %c0_10 = arith.constant 0 : index
    %10 = vector.load %arg5[%c0_9, %c0_10] : memref<1x32xf32, #tpu.memory_space<vmem>>, vector<1x32xf32>
    %11 = vector.broadcast %10 : vector<1x32xf32> to vector<8x32xf32>
    %12 = arith.addf %9, %11 : vector<8x32xf32>
    %cst_11 = arith.constant 0.000000e+00 : f32
    %13 = vector.broadcast %cst_11 : f32 to vector<8x32xf32>
    %14 = arith.maximumf %12, %13 : vector<8x32xf32>
    %c0_12 = arith.constant 0 : index
    %c0_13 = arith.constant 0 : index
    %15 = vector.load %arg6[%c0_12, %c0_13] : memref<32x128xf32, #tpu.memory_space<vmem>>, vector<32x128xf32>
    %cst_14 = arith.constant dense<0.000000e+00> : vector<8x128xf32>
    %16 = tpu.matmul %14, %15, %cst_14 {dimension_numbers = #tpu.dot_dimension_numbers<[1], [0], [0], [1], [0, 0, 1, 1], [], []>} : vector<8x32xf32>, vector<32x128xf32>, vector<8x128xf32> -> vector<8x128xf32>
    %c0_15 = arith.constant 0 : index
    %c0_16 = arith.constant 0 : index
    %17 = vector.load %arg7[%c0_15, %c0_16] : memref<1x128xf32, #tpu.memory_space<vmem>>, vector<1x128xf32>
    %18 = vector.broadcast %17 : vector<1x128xf32> to vector<8x128xf32>
    %19 = arith.addf %16, %18 : vector<8x128xf32>
    %cst_17 = arith.constant 0.000000e+00 : f32
    %20 = vector.broadcast %cst_17 : f32 to vector<8x128xf32>
    %21 = arith.maximumf %19, %20 : vector<8x128xf32>
    %c0_18 = arith.constant 0 : index
    %c0_19 = arith.constant 0 : index
    %22 = vector.load %arg8[%c0_18, %c0_19] : memref<8x128xf32, #tpu.memory_space<vmem>>, vector<8x128xf32>
    tpu.vector_store %arg8[%c0_18, %c0_19], %21 {strides = array<i32>} : memref<8x128xf32, #tpu.memory_space<vmem>>, vector<8x128xf32>,
    return
  }
  func.func @transform_0(%arg0: i32) -> (i32, i32) {
    %c0_i32 = arith.constant 0 : i32
    %c0_i32_0 = arith.constant 0 : i32
    return %arg0, %c0_i32 : i32, i32
  }
  func.func @transform_1(%arg0: i32) -> (i32, i32) {
    %c0_i32 = arith.constant 0 : i32
    %c0_i32_0 = arith.constant 0 : i32
    %c0_i32_1 = arith.constant 0 : i32
    return %c0_i32, %c0_i32_0 : i32, i32
  }
  func.func @transform_2(%arg0: i32) -> (i32, i32) {
    %c0_i32 = arith.constant 0 : i32
    %c0_i32_0 = arith.constant 0 : i32
    %c0_i32_1 = arith.constant 0 : i32
    return %c0_i32, %c0_i32_0 : i32, i32
  }
  func.func @transform_3(%arg0: i32) -> (i32, i32) {
    %c0_i32 = arith.constant 0 : i32
    %c0_i32_0 = arith.constant 0 : i32
    %c0_i32_1 = arith.constant 0 : i32
    return %c0_i32, %c0_i32_0 : i32, i32
  }
  func.func @transform_4(%arg0: i32) -> (i32, i32) {
    %c0_i32 = arith.constant 0 : i32
    %c0_i32_0 = arith.constant 0 : i32
    %c0_i32_1 = arith.constant 0 : i32
    return %c0_i32, %c0_i32_0 : i32, i32
  }
  func.func @transform_5(%arg0: i32) -> (i32, i32) {
    %c0_i32 = arith.constant 0 : i32
    %c0_i32_0 = arith.constant 0 : i32
    %c0_i32_1 = arith.constant 0 : i32
    return %c0_i32, %c0_i32_0 : i32, i32
  }
  func.func @transform_6(%arg0: i32) -> (i32, i32) {
    %c0_i32 = arith.constant 0 : i32
    %c0_i32_0 = arith.constant 0 : i32
    %c0_i32_1 = arith.constant 0 : i32
    return %c0_i32, %c0_i32_0 : i32, i32
  }
  func.func @transform_7(%arg0: i32) -> (i32, i32) {
    %c0_i32 = arith.constant 0 : i32
    %c0_i32_0 = arith.constant 0 : i32
    return %arg0, %c0_i32 : i32, i32
  }
}

</mosaic_0001>

<bundles_post_ra>
// kernel: tpu_custom_call.1
= control target key start
LH: loop header
LB: loop body
LE: loop exit
PB: predicated region body
PF: predicated region fallthrough
CT: control target
= control target key end

     0   :  { %12 = vsyncpa [#allocation3], 0  ;;  %s414_s0 = inlined_call_operand.hbm [shape: f32[8,8], index: 0, kind: input, shape index: {}]   ;;  %s415_s1 = inlined_call_operand.hbm [shape: f32[8,32], index: 1, kind: input, shape index: {}]   ;;  %s416_s2 = inlined_call_operand.vmem [shape: f32[1,32], index: 2, kind: input, shape index: {}]   ;;  %s417_s3 = inlined_call_operand.hbm [shape: f32[32,32], index: 3, kind: input, shape index: {}]   ;;  %s418_s4 = inlined_call_operand.vmem [shape: f32[1,32], index: 4, kind: input, shape index: {}]   ;;  %s419_s5 = inlined_call_operand.hbm [shape: f32[32,128], index: 5, kind: input, shape index: {}]   ;;  %s420_s6 = inlined_call_operand.vmem [shape: f32[1,128], index: 6, kind: input, shape index: {}]   ;;  %s421_s7 = inlined_call_operand.hbm [shape: f32[8,128], index: 7, kind: output, shape index: {}]  }
   0x1   :  { %13 = vsyncpa [#allocation6], 0 }
   0x2   :  { %14 = vsyncpa [#allocation9], 0  ;;  %s32_s26 = sshll.u32 %s415_s1, 4  ;;  %s33_s26 = int_to_ptr.hbm [resolvable:$true] %s32_s26 }
   0x3   :  { %15 = vsyncpa [#allocation4], 0  ;;  %s343_s27 = smov [#allocation5]   ;;  %s21_s8 = sshll.u32 %s414_s0, 4  ;;  %s22_s8 = int_to_ptr.hbm [resolvable:$true] %s21_s8 }
   0x4   :  { %s34_s28 = sshll.u32 %s343_s27, 4  ;;  %s344_s9 = smov [#allocation2]   ;;  %s35_s28 = int_to_ptr.vmem [resolvable:$true] %s34_s28 }
   0x5   :  { %37 = dma.hbm_to_vmem [thread:$0]  %s33_s26, 128, %s35_s28, [#allocation6]  }
   0x6   :  { %s23_s10 = sshll.u32 %s344_s9, 4  ;;  %s44_s13 = sshll.u32 %s417_s3, 4  ;;  %s24_s10 = int_to_ptr.vmem [resolvable:$true] %s23_s10  ;;  %s45_s13 = int_to_ptr.hbm [resolvable:$true] %s44_s13 }
   0x7   :  { %26 = dma.hbm_to_vmem [thread:$0]  %s22_s8, 128, %s24_s10, [#allocation3]  }
   0x8   :  { %s345_s1 = smov [#allocation7]   ;;  %s59_s17 = sshll.u32 %s419_s5, 4  ;;  %s60_s17 = int_to_ptr.hbm [resolvable:$true] %s59_s17 }
   0x9   :  { %s46_s14 = sshll.u32 %s345_s1, 4  ;;  %s346_s18 = smov 128   ;;  %s47_s14 = int_to_ptr.vmem [resolvable:$true] %s46_s14 }
   0xa   :  { %s347_s0 = smov 8   ;;  %s348_s19 = smov [#allocation8]  }
   0xb   :  { %52 = dma.hbm_to_vmem [thread:$0]  %s45_s13, 512, %s47_s14, [#allocation6], %s346_s18, %s346_s18, %s347_s0  }
   0xc   :  { %s61_s20 = sshll.u32 %s348_s19, 4  ;;  %s62_s20 = int_to_ptr.vmem [resolvable:$true] %s61_s20 }
   0xd   :  { %67 = dma.hbm_to_vmem [thread:$0]  %s60_s17, 512, %s62_s20, [#allocation9], %s346_s18, %s346_s18, %s347_s0  }
   0xe   :  { %335 = dma.done.wait [#allocation3], 128  }
   0xf   :  { %336 = vsyncadd [#allocation3], 4294967168 }
  0x10   :  { %337 = dma.done.wait [#allocation6], 640  }
  0x11   :  { %338 = vsyncadd [#allocation6], 4294966656 }
  0x12   :  { %339 = dma.done.wait [#allocation9], 512  }
  0x13   :  { %340 = vsyncadd [#allocation9], 4294966784  ;;  %vm92_vm0 = vcmask 64512   ;;  %v87_v0 = vld [vmem:[#allocation5] sm:$0xff]  ;;  %v86_v1 = vld [vmem:[#allocation2] sm:$0xff]  ;;  %vm125_vm1 = vcmask 261120  }
  0x14   :  { %v120_v2 = vld [vmem:[#allocation7 + $0x18] sm:$0xff]  ;;  %111 = vmatpush.msra.mxu0 %v87_v0  ;;  %v119_v3 = vld [vmem:[#allocation7 + $0x10] sm:$0xff]  ;;  %v118_v4 = vld [vmem:[#allocation7 + $0x8] sm:$0xff]  ;;  %s349_s24 = smov [#allocation10]   ;;  %s190_s28 = sshll.u32 %s421_s7, 4  ;;  %s191_s28 = int_to_ptr.hbm [resolvable:$true] %s190_s28 }
  0x15   :  { %141 = vmatpush.msra.mxu1 %v120_v2  ;;  %202 = vmatmul.msk.f32.vlgmr.msra.gmra.mxu0 %vm92_vm0, %v86_v1  ;;  %v117_v5 = vld [vmem:[#allocation7] sm:$0xff]  ;;  %v153_v6 = vld [vmem:[#allocation8 + $0x18] sm:$0xff]  ;;  %v212_v7 = vld [vmem:[%s416_s2] ss:$0 sm:$0xff]  ;;  %s188_s25 = sshll.u32 %s349_s24, 4  ;;  %s189_s25 = int_to_ptr.vmem [resolvable:$true] %s188_s25 }
  0x16   :  { %173 = vmatpush.msra.mxu2 %v153_v6  ;;  %v152_v11 = vld [vmem:[#allocation8 + $0x10] sm:$0xff]  ;;  %v151_v12 = vld [vmem:[#allocation8 + $0x8] sm:$0xff]  ;;  %v150_v13 = vld [vmem:[#allocation8] sm:$0xff] }
  0x17   :  { %142 = vmatpush.msra.mxu1 %v119_v3  ;;  %v213_v14 = vld [vmem:[%s418_s4] ss:$0 sm:$0xff] }
  0x18   :  { %174 = vmatpush.msra.mxu2 %v152_v11  ;;  %v214_v18 = vld [vmem:[%s420_s6] ss:$0 sm:$0xff] }
  0x19   :  { %143 = vmatpush.msra.mxu1 %v118_v4 }
  0x1a   :  { %175 = vmatpush.msra.mxu2 %v151_v12 }
  0x1b   :  { %144 = vmatpush.msra.mxu1 %v117_v5 }
  0x1c   :  { %176 = vmatpush.msra.mxu2 %v150_v13 }
  0x92   :  { %v113_v8 = vpop.f32.mrf.mxu0 }
  0x93   :  { %v114_v9 = vadd.f32 %v212_v7, %v113_v8 }
  0x95   :  { %v116_v10 = vmax.f32 %v114_v9, 0.0 }
  0x97   :  { %203 = vmatmul.msk.f32.vlgmr.msra.gmra.mxu1 %vm125_vm1, %v116_v10 }
 0x114   :  { %v146_v15 = vpop.f32.mrf.mxu1 }
 0x115   :  { %v147_v16 = vadd.f32 %v213_v14, %v146_v15 }
 0x117   :  { %v149_v17 = vmax.f32 %v147_v16, 0.0 }
 0x119   :  { %204 = vmatmul.msk.f32.vlgmr.msra.gmra.mxu2 %vm125_vm1, %v149_v17 }
 0x19c   :  { %v178_v19 = vpop.f32.mrf.mxu2 }
 0x19d   :  { %v179_v20 = vadd.f32 %v214_v18, %v178_v19 }
 0x19f   :  { %v181_v21 = vmax.f32 %v179_v20, 0.0 }
 0x1a1   :  { %182 = vst [vmem:[#allocation10] sm:$0xff] %v181_v21 }
 0x1a2   :  { %193 = dma.vmem_to_hbm [thread:$0]  %s189_s25, 128, %s191_s28, [#allocation4]  }
 0x1a3   :  { %341 = dma.done.wait [#allocation4], 128  }
 0x1a4   :  { %342 = vsyncadd [#allocation4], 4294967168 }
 0x1a5   :  { %198 = vsyncpa [#allocation3], 1 }
 0x1a6   :  { %199 = vsyncpa [#allocation6], 1 }
 0x1a7   :  { %200 = vsyncpa [#allocation9], 1 }
 0x1a8   :  { %201 = vsyncpa [#allocation4], 1 }

</bundles_post_ra>
